<compile_context>
chip_gen: v7x
topology: tpu7x:2x2x1
jax: 0.10.0
libtpu: 0.0.40
codegen_flags: <defaults>
</compile_context>

<pallas_src>
import jax
import jax.numpy as jnp
from jax.experimental import pallas as pl
from jax.experimental.pallas import tpu as pltpu

_LANES = 128


def _cdiv(a: int, b: int) -> int:
    return (a + b - 1) // b


def _round_up(a: int, b: int) -> int:
    return _cdiv(a, b) * b


def _sublane_gran(dtype) -> int:
    # Native sublane packing of the (8,128) vreg tile: 8 rows for 4-byte,
    # 16 for 2-byte, 32 for 1-byte element types.
    return max(8, 32 // jnp.dtype(dtype).itemsize)


def _choose_tiling(rows: int, gran: int, target: int):
    """Pick (num_outer, num_inner, tile_rows).

    Prefers zero padding (avoids a wrapper-side copy), then a 2-way outer
    split (both TensorCores on v7x), then minimal padding.  tile_rows is
    always a multiple of 8 (and of `gran` on every multi-tile path).
    """
    target = max(gran, _round_up(target, gran))
    cands = []
    if rows <= target and rows % 8 == 0:
        cands.append((1, 1, rows))            # single full-array block, exact
    for num_outer in (2, 1):
        if num_outer == 2 and rows < 2 * gran:
            continue
        per_chunk = _cdiv(rows, num_outer)
        num_inner = _cdiv(per_chunk, target)
        tile = _round_up(_cdiv(per_chunk, num_inner), gran)
        cands.append((num_outer, num_inner, tile))

    def key(c):
        no, ni, t = c
        pad = no * ni * t - rows
        return (pad > 0, -no, pad)

    return min(cands, key=key)


def _ntp_loss_kernel(x_ref, y_ref, out_ref):
    """One batch tile of binary cross-entropy, accumulated into out_ref."""
    i = pl.program_id(1)                      # inner (reduction) grid axis

    @pl.when(i == 0)
    def _init():
        out_ref[...] = jnp.zeros_like(out_ref)

    x = x_ref[...].astype(jnp.float32)        # (T, 256): lanes 2s/2s+1 = x0_s/x1_s
    y = y_ref[...].astype(jnp.float32)        # (T, 128): lane s = label of sample s

    # Deinterleave + subtract on the (otherwise idle) MXU with a constant
    # selection matrix:  D[k, l] = +1 if k == 2l+1, -1 if k == 2l, else 0,
    # so  z[:, l] = x[:, 2l+1] - x[:, 2l] = x1_l - x0_l   (exact; entries are
    # 0/±1 and the accumulation only ever adds zeros plus one ± term each).
    k = jax.lax.broadcasted_iota(jnp.int32, (2 * _LANES, _LANES), 0)
    l = jax.lax.broadcasted_iota(jnp.int32, (2 * _LANES, _LANES), 1)
    dmat = (jnp.where(k == 2 * l + 1, 1.0, 0.0)
            - jnp.where(k == 2 * l, 1.0, 0.0))
    z = jnp.dot(x, dmat, preferred_element_type=jnp.float32)   # (T, 128)

    # Closed-form binary cross-entropy, numerically stable softplus:
    #   loss = softplus((1 - 2y) * (x1 - x0)) = max(zs, 0) + log(1 + exp(-|zs|))
    zs = (1.0 - 2.0 * y) * z
    loss = jnp.maximum(zs, 0.0) + jnp.log(1.0 + jnp.exp(-jnp.abs(zs)))

    # Fold the (T, 128) tile into the resident (8, 128) accumulator — pure vreg
    # adds; the single cross-lane reduction happens once, in the wrapper.
    rows = loss.shape[0]
    out_ref[...] += jnp.sum(loss.reshape(rows // 8, 8, _LANES), axis=0)


def ntp_loss(logits: jax.Array, labels: jax.Array, *,
             tile_rows: int | None = None) -> jax.Array:
    """Mean cross-entropy matching nn.CrossEntropyLoss() for 2-class logits.

    Args:
        logits: (B, 2) float array (f32 / bf16 / f16).
        labels: (B,) integer array of class indices in {0, 1} (any int dtype;
                int8 labels minimize HBM traffic).
    Returns:
        scalar float32 loss.
    """
    B, C = logits.shape
    if C != 2:
        raise ValueError(f"NTPLoss expects binary logits (batch, 2), got C={C}")

    gran = max(_sublane_gran(logits.dtype), _sublane_gran(labels.dtype))
    rows_needed = _cdiv(B, _LANES)
    target = 2048 if tile_rows is None else max(1, int(tile_rows))

    num_outer, num_inner, tile = _choose_tiling(rows_needed, gran, target)
    rows_padded = num_outer * num_inner * tile
    b_padded = rows_padded * _LANES
    pad = b_padded - B

    if pad > 0:
        # Finite sentinel so padded samples contribute exactly zero loss:
        # label 0 -> loss = softplus(x1 - x0) = softplus(very_negative) == 0.
        neg = float(jnp.finfo(logits.dtype).min) / 2
        sentinel = jnp.array([0.0, neg], dtype=logits.dtype)
        logits_p = jnp.concatenate(
            [logits, jnp.broadcast_to(sentinel, (pad, 2))], axis=0)
        labels_p = jnp.pad(labels, (0, pad))          # pads with class 0
    else:
        logits_p, labels_p = logits, labels

    # Pure layout plumbing: row-major contiguous reshapes (free when pad == 0).
    x = logits_p.reshape(rows_padded, 2 * _LANES)     # interleaved x0/x1 per lane pair
    y = labels_p.reshape(rows_padded, _LANES)         # lane-dense labels

    partial = pl.pallas_call(
        _ntp_loss_kernel,
        out_shape=jax.ShapeDtypeStruct((num_outer * 8, _LANES), jnp.float32),
        grid=(num_outer, num_inner),
        in_specs=[
            pl.BlockSpec((tile, 2 * _LANES), lambda j, i: (j * num_inner + i, 0)),
            pl.BlockSpec((tile, _LANES), lambda j, i: (j * num_inner + i, 0)),
        ],
        out_specs=pl.BlockSpec((8, _LANES), lambda j, i: (j, 0)),
        compiler_params=pltpu.CompilerParams(
            dimension_semantics=("parallel", "arbitrary")),
    )(x, y)

    return jnp.sum(partial) * (1.0 / B)


if __name__ == "__main__":
    key = jax.random.PRNGKey(0)
    k_logits, k_labels = jax.random.split(key)

    batch, num_classes = 8, 2  # binary next-track prediction
    logits = jax.random.normal(k_logits, (batch, num_classes), dtype=jnp.float32)
    labels = jax.random.randint(k_labels, (batch,), 0, num_classes, dtype=jnp.int32)

    def ref_loss(lg, lb):
        lp = jax.nn.log_softmax(lg.astype(jnp.float32), axis=-1)
        return -jnp.mean(jnp.take_along_axis(lp, lb[:, None], axis=-1))

    loss = ntp_loss(logits, labels)
    jax.block_until_ready(loss)
    assert jnp.allclose(loss, ref_loss(logits, labels), atol=1e-5, rtol=1e-5), (
        loss, ref_loss(logits, labels))

    # Multi-tile + two-chunk "parallel" path + ragged (padded) tail.
    k2, k3 = jax.random.split(jax.random.PRNGKey(1))
    b2 = 40000
    logits2 = jax.random.normal(k2, (b2, 2), dtype=jnp.float32)
    labels2 = jax.random.randint(k3, (b2,), 0, 2, dtype=jnp.int32)
    loss2 = ntp_loss(logits2, labels2, tile_rows=32)
    jax.block_until_ready(loss2)
    assert jnp.allclose(loss2, ref_loss(logits2, labels2), atol=1e-5, rtol=1e-5)

    # Exactly-aligned batch (zero-padding / zero-copy path).
    k4, k5 = jax.random.split(jax.random.PRNGKey(2))
    b3 = 65536
    logits3 = jax.random.normal(k4, (b3, 2), dtype=jnp.float32)
    labels3 = jax.random.randint(k5, (b3,), 0, 2, dtype=jnp.int32)
    loss3 = ntp_loss(logits3, labels3)
    jax.block_until_ready(loss3)
    assert jnp.allclose(loss3, ref_loss(logits3, labels3), atol=1e-5, rtol=1e-5)

    # Native-bf16 logits (cast to f32 happens in-kernel).
    loss4 = ntp_loss(logits2.astype(jnp.bfloat16), labels2)
    jax.block_until_ready(loss4)
    assert jnp.allclose(loss4, ref_loss(logits2.astype(jnp.bfloat16), labels2),
                        atol=1e-5, rtol=1e-5)

    print("KERNEL_OK")
</pallas_src>

<mosaic_0001>
module attributes {stable_mosaic.version = 11 : i64} {
  func.func @_ntp_loss_kernel(%arg0: i32, %arg1: i32, %arg2: memref<8x256xf32, #tpu.memory_space<vmem>>, %arg3: memref<8x128xi32, #tpu.memory_space<vmem>>, %arg4: memref<8x128xf32, #tpu.memory_space<vmem>>) attributes {dimension_semantics = [#tpu.dimension_semantics<parallel>, #tpu.dimension_semantics<arbitrary>], iteration_bounds = array<i64: 1, 1>, scalar_prefetch = 0 : i64, scratch_operands = 0 : i64, tpu.core_type = #tpu.core_type<tc>, window_params = [{transform_indices = @transform_0, window_bounds = array<i64: 8, 256>}, {transform_indices = @transform_1, window_bounds = array<i64: 8, 128>}, {transform_indices = @transform_2, window_bounds = array<i64: 8, 128>}]} {
    %c0_i32 = arith.constant 0 : i32
    %0 = arith.cmpi eq, %arg1, %c0_i32 : i32
    %1 = arith.extui %0 : i1 to i32
    %c0_i32_0 = arith.constant 0 : i32
    %2 = arith.cmpi ne, %1, %c0_i32_0 : i32
    scf.if %2 {
      %cst_19 = arith.constant 0.000000e+00 : f32
      %44 = vector.broadcast %cst_19 : f32 to vector<8x128xf32>
      %c0_20 = arith.constant 0 : index
      %c0_21 = arith.constant 0 : index
      %45 = vector.load %arg4[%c0_20, %c0_21] : memref<8x128xf32, #tpu.memory_space<vmem>>, vector<8x128xf32>
      tpu.vector_store %arg4[%c0_20, %c0_21], %44 {strides = array<i32>} : memref<8x128xf32, #tpu.memory_space<vmem>>, vector<8x128xf32>,
    } else {
    }
    %c0 = arith.constant 0 : index
    %c0_1 = arith.constant 0 : index
    %3 = vector.load %arg2[%c0, %c0_1] : memref<8x256xf32, #tpu.memory_space<vmem>>, vector<8x256xf32>
    %c0_2 = arith.constant 0 : index
    %c0_3 = arith.constant 0 : index
    %4 = vector.load %arg3[%c0_2, %c0_3] : memref<8x128xi32, #tpu.memory_space<vmem>>, vector<8x128xi32>
    %5 = arith.sitofp %4 : vector<8x128xi32> to vector<8x128xf32>
    %6 = tpu.iota {dimensions = array<i32: 0>} : vector<256x128xi32>
    %7 = tpu.iota {dimensions = array<i32: 1>} : vector<256x128xi32>
    %c2_i32 = arith.constant 2 : i32
    %8 = vector.broadcast %c2_i32 : i32 to vector<256x128xi32>
    %9 = arith.muli %8, %7 : vector<256x128xi32>
    %c1_i32 = arith.constant 1 : i32
    %10 = vector.broadcast %c1_i32 : i32 to vector<256x128xi32>
    %11 = arith.addi %9, %10 : vector<256x128xi32>
    %12 = arith.cmpi eq, %6, %11 : vector<256x128xi32>
    %cst = arith.constant 1.000000e+00 : f32
    %cst_4 = arith.constant 0.000000e+00 : f32
    %13 = vector.broadcast %cst : f32 to vector<256x128xf32>
    %14 = vector.broadcast %cst_4 : f32 to vector<256x128xf32>
    %15 = arith.select %12, %13, %14 : vector<256x128xi1>, vector<256x128xf32>
    %c2_i32_5 = arith.constant 2 : i32
    %16 = vector.broadcast %c2_i32_5 : i32 to vector<256x128xi32>
    %17 = arith.muli %16, %7 : vector<256x128xi32>
    %18 = arith.cmpi eq, %6, %17 : vector<256x128xi32>
    %cst_6 = arith.constant 1.000000e+00 : f32
    %cst_7 = arith.constant 0.000000e+00 : f32
    %19 = vector.broadcast %cst_6 : f32 to vector<256x128xf32>
    %20 = vector.broadcast %cst_7 : f32 to vector<256x128xf32>
    %21 = arith.select %18, %19, %20 : vector<256x128xi1>, vector<256x128xf32>
    %22 = arith.subf %15, %21 : vector<256x128xf32>
    %cst_8 = arith.constant dense<0.000000e+00> : vector<8x128xf32>
    %23 = tpu.matmul %3, %22, %cst_8 {dimension_numbers = #tpu.dot_dimension_numbers<[1], [0], [0], [1], [0, 0, 1, 1], [], []>} : vector<8x256xf32>, vector<256x128xf32>, vector<8x128xf32> -> vector<8x128xf32>
    %cst_9 = arith.constant 2.000000e+00 : f32
    %24 = vector.broadcast %cst_9 : f32 to vector<8x128xf32>
    %25 = arith.mulf %24, %5 : vector<8x128xf32>
    %cst_10 = arith.constant 1.000000e+00 : f32
    %26 = vector.broadcast %cst_10 : f32 to vector<8x128xf32>
    %27 = arith.subf %26, %25 : vector<8x128xf32>
    %28 = arith.mulf %27, %23 : vector<8x128xf32>
    %cst_11 = arith.constant 0.000000e+00 : f32
    %29 = vector.broadcast %cst_11 : f32 to vector<8x128xf32>
    %30 = arith.maximumf %28, %29 : vector<8x128xf32>
    %31 = math.absf %28 : vector<8x128xf32>
    %cst_12 = arith.constant 0.000000e+00 : f32
    %32 = vector.broadcast %cst_12 : f32 to vector<8x128xf32>
    %33 = arith.subf %32, %31 : vector<8x128xf32>
    %34 = math.exp %33 : vector<8x128xf32>
    %cst_13 = arith.constant 1.000000e+00 : f32
    %35 = vector.broadcast %cst_13 : f32 to vector<8x128xf32>
    %36 = arith.addf %35, %34 : vector<8x128xf32>
    %37 = math.log %36 : vector<8x128xf32>
    %38 = arith.addf %30, %37 : vector<8x128xf32>
    %c0_14 = arith.constant 0 : index
    %c0_15 = arith.constant 0 : index
    %39 = vector.load %arg4[%c0_14, %c0_15] : memref<8x128xf32, #tpu.memory_space<vmem>>, vector<8x128xf32>
    %40 = vector.shape_cast %38 : vector<8x128xf32> to vector<1x8x128xf32>
    %cst_16 = arith.constant dense<0.000000e+00> : vector<8x128xf32>
    %41 = vector.multi_reduction <add>, %40, %cst_16 [0] : vector<1x8x128xf32> to vector<8x128xf32>
    %42 = arith.addf %39, %41 : vector<8x128xf32>
    %c0_17 = arith.constant 0 : index
    %c0_18 = arith.constant 0 : index
    %43 = vector.load %arg4[%c0_17, %c0_18] : memref<8x128xf32, #tpu.memory_space<vmem>>, vector<8x128xf32>
    tpu.vector_store %arg4[%c0_17, %c0_18], %42 {strides = array<i32>} : memref<8x128xf32, #tpu.memory_space<vmem>>, vector<8x128xf32>,
    return
  }
  func.func @transform_0(%arg0: i32, %arg1: i32) -> (i32, i32) {
    %c1_i32 = arith.constant 1 : i32
    %0 = arith.muli %arg0, %c1_i32 : i32
    %1 = arith.addi %0, %arg1 : i32
    %c0_i32 = arith.constant 0 : i32
    %c0_i32_0 = arith.constant 0 : i32
    return %1, %c0_i32 : i32, i32
  }
  func.func @transform_1(%arg0: i32, %arg1: i32) -> (i32, i32) {
    %c1_i32 = arith.constant 1 : i32
    %0 = arith.muli %arg0, %c1_i32 : i32
    %1 = arith.addi %0, %arg1 : i32
    %c0_i32 = arith.constant 0 : i32
    %c0_i32_0 = arith.constant 0 : i32
    return %1, %c0_i32 : i32, i32
  }
  func.func @transform_2(%arg0: i32, %arg1: i32) -> (i32, i32) {
    %c0_i32 = arith.constant 0 : i32
    %c0_i32_0 = arith.constant 0 : i32
    return %arg0, %c0_i32 : i32, i32
  }
}

</mosaic_0001>

<bundles_post_ra>
// kernel: tpu_custom_call.1
= control target key start
LH: loop header
LB: loop body
LE: loop exit
PB: predicated region body
PF: predicated region fallthrough
CT: control target
= control target key end

     0   :  { %7 = vsyncpa [#allocation3], 0  ;;  %s723_s0 = inlined_call_operand.hbm [shape: f32[8,256], index: 0, kind: input, shape index: {}]   ;;  %s724_s1 = inlined_call_operand.hbm [shape: s32[8,128], index: 1, kind: input, shape index: {}]   ;;  %s725_s2 = inlined_call_operand.hbm [shape: f32[8,128], index: 2, kind: output, shape index: {}]  }
   0x1   :  { %8 = vsyncpa [#allocation6], 0 }
   0x2   :  { %9 = vsyncpa [#allocation4], 0  ;;  %s500_s9 = smov [#allocation2]   ;;  %s501_s11 = smov [#allocation5]  }
   0x3   :  { %s20_s10 = sshll.u32 %s500_s9, 4  ;;  %s33_s12 = sshll.u32 %s501_s11, 4  ;;  %s21_s10 = int_to_ptr.vmem [resolvable:$true] %s20_s10  ;;  %s34_s12 = int_to_ptr.vmem [resolvable:$true] %s33_s12 }
   0x4   :  { %s428_s15 = scalar_lea.hbm %s723_s0, 256 }
   0x5   :  { %p429_p0 = scmp.ne.s32.totalorder %s723_s0, %s428_s15  ;;  %p432_p1 = scmp.lt.u32.totalorder %s428_s15, %s723_s0 }
   0x7   :  { %p434_p2 = pnand %p432_p1, %p429_p0 }
   0x9   :  { %437 = shalt.err (!%p434_p2)
}
   0xa   :  { %s438_s20 = scalar_lea.vmem %s21_s10, 256  ;;  %p443_p4 = scmp.lt.s32.totalorder %s21_s10, %s21_s10 }
   0xb   :  { %p439_p3 = scmp.ne.s32.totalorder %s21_s10, %s438_s20  ;;  %p444_p5 = scmp.lt.s32.totalorder %s438_s20, %s438_s20 }
   0xd   :  { %p445_p6 = por %p444_p5, %p443_p4 }
   0xf   :  { %p446_p7 = pnand %p445_p6, %p439_p3 }
  0x11   :  { %449 = shalt.err (!%p446_p7)
}
  0x12   :  { %23 = dma.hbm_to_vmem [thread:$0]  %s723_s0, 256, %s21_s10, [#allocation3]  }
  0x13   :  { %s450_s25 = scalar_lea.hbm %s724_s1, 128 }
  0x14   :  { %p451_p8 = scmp.ne.s32.totalorder %s724_s1, %s450_s25  ;;  %p454_p9 = scmp.lt.u32.totalorder %s450_s25, %s724_s1 }
  0x16   :  { %p456_p10 = pnand %p454_p9, %p451_p8 }
  0x18   :  { %459 = shalt.err (!%p456_p10)
}
  0x19   :  { %s460_s30 = scalar_lea.vmem %s34_s12, 128  ;;  %p465_p12 = scmp.lt.s32.totalorder %s34_s12, %s34_s12 }
  0x1a   :  { %p461_p11 = scmp.ne.s32.totalorder %s34_s12, %s460_s30  ;;  %p466_p13 = scmp.lt.s32.totalorder %s460_s30, %s460_s30 }
  0x1c   :  { %p467_p0 = por %p466_p13, %p465_p12 }
  0x1e   :  { %p468_p1 = pnand %p467_p0, %p461_p11 }
  0x20   :  { %471 = shalt.err (!%p468_p1)
}
  0x21   :  { %36 = dma.hbm_to_vmem [thread:$0]  %s724_s1, 128, %s34_s12, [#allocation6]  }
  0x22   :  { %494 = dma.done.wait [#allocation3], 256  }
  0x23   :  { %495 = vsyncadd [#allocation3], 4294967040  ;;  %v54_v0 = vlaneseq }
  0x24   :  { %496 = dma.done.wait [#allocation6], 128  }
  0x25   :  { %497 = vsyncadd [#allocation6], 4294967168  ;;  %v543_v1 = vshrl.u32 %v54_v0, 7  ;;  %v88_v2 = vand.u32 127, %v54_v0  ;;  %v502_v12 = vmov 0.0   ;;  %v51_v16 = vld [vmem:[#allocation2 + $0x8] sm:$0xff] }
  0x26   :  { %315 = vmatprep.mubr.f32.mxu0 %v51_v16  ;;  %s503_s1 = smov [#allocation7]  }
  0x27   :  { %v71_v3 = vadd.s32 128, %v543_v1  ;;  %v72_v4 = vadd.s32 136, %v543_v1  ;;  %v547_v5 = vmul.u32 2, %v88_v2  ;;  %v56_v6 = vadd.s32 8, %v543_v1  ;;  %s343_s4 = sshll.u32 %s503_s1, 4  ;;  %s344_s4 = int_to_ptr.vmem [resolvable:$true] %s343_s4 }
  0x28   :  { %v73_v7 = vadd.s32 144, %v543_v1  ;;  %v74_v8 = vadd.s32 152, %v543_v1  ;;  %v57_v9 = vadd.s32 16, %v543_v1  ;;  %v58_v10 = vadd.s32 24, %v543_v1  ;;  %s472_s5 = scalar_lea.vmem %s344_s4, 128  ;;  %p477_p3 = scmp.lt.s32.totalorder %s344_s4, %s344_s4 }
  0x29   :  { %v555_v11 = vadd.s32 1, %v547_v5  ;;  %vm171_vm0 = vcmp.eq.s32.totalorder %v71_v3, %v547_v5  ;;  %vm172_vm1 = vcmp.eq.s32.totalorder %v72_v4, %v547_v5  ;;  %vm155_vm2 = vcmp.eq.s32.totalorder %v543_v1, %v547_v5  ;;  %p473_p2 = scmp.ne.s32.totalorder %s344_s4, %s472_s5  ;;  %p478_p4 = scmp.lt.s32.totalorder %s472_s5, %s472_s5 }
  0x2a   :  { %v203_v13 = vsel %vm171_vm0, 1.0, %v502_v12  ;;  %v204_v14 = vsel %vm172_vm1, 1.0, %v502_v12  ;;  %vm156_vm3 = vcmp.eq.s32.totalorder %v56_v6, %v547_v5  ;;  %v187_v15 = vsel %vm155_vm2, 1.0, %v502_v12 }
  0x2b   :  { %vm107_vm4 = vcmp.eq.s32.totalorder %v71_v3, %v555_v11  ;;  %vm108_vm5 = vcmp.eq.s32.totalorder %v72_v4, %v555_v11  ;;  %vm91_vm6 = vcmp.eq.s32.totalorder %v543_v1, %v555_v11  ;;  %vm92_vm7 = vcmp.eq.s32.totalorder %v56_v6, %v555_v11  ;;  %p479_p5 = por %p478_p4, %p477_p3 }
  0x2c   :  { %v139_v17 = vsel %vm107_vm4, 1.0, %v502_v12  ;;  %v140_v18 = vsel %vm108_vm5, 1.0, %v502_v12  ;;  %v123_v19 = vsel %vm91_vm6, 1.0, %v502_v12  ;;  %v124_v20 = vsel %vm92_vm7, 1.0, %v502_v12 }
  0x2d   :  { %v235_v21 = vsub.f32 %v139_v17, %v203_v13  ;;  %v236_v22 = vsub.f32 %v140_v18, %v204_v14  ;;  %v188_v23 = vsel %vm156_vm3, 1.0, %v502_v12  ;;  %v219_v24 = vsub.f32 %v123_v19, %v187_v15  ;;  %p480_p6 = pnand %p479_p5, %p473_p2 }
  0x2e   :  { %v220_v25 = vsub.f32 %v124_v20, %v188_v23  ;;  %vm109_vm8 = vcmp.eq.s32.totalorder %v73_v7, %v555_v11  ;;  %vm110_vm9 = vcmp.eq.s32.totalorder %v74_v8, %v555_v11  ;;  %vm173_vm10 = vcmp.eq.s32.totalorder %v73_v7, %v547_v5 }
  0x2f   :  { %v388_v26 = vpack.c.bf16 %v236_v22, %v235_v21  ;;  %v141_v27 = vsel %vm109_vm8, 1.0, %v502_v12  ;;  %v142_v28 = vsel %vm110_vm9, 1.0, %v502_v12  ;;  %vm174_vm11 = vcmp.eq.s32.totalorder %v74_v8, %v547_v5 }
  0x30   :  { %v390_v29 = vpack.c.bf16 %v220_v25, %v219_v24  ;;  %v205_v30 = vsel %vm173_vm10, 1.0, %v502_v12  ;;  %v206_v31 = vsel %vm174_vm11, 1.0, %v502_v12  ;;  %vm93_vm12 = vcmp.eq.s32.totalorder %v57_v9, %v555_v11 }
  0x31   :  { %389 = vmatprep.subr.bf16.mxu0 %v388_v26  ;;  %v237_v32 = vsub.f32 %v141_v27, %v205_v30  ;;  %v238_v33 = vsub.f32 %v142_v28, %v206_v31  ;;  %vm94_vm13 = vcmp.eq.s32.totalorder %v58_v10, %v555_v11  ;;  %v125_v34 = vsel %vm93_vm12, 1.0, %v502_v12 }
  0x32   :  { %391 = vmatpush3.bf16.msra.mxu0 %v390_v29  ;;  %v126_v35 = vsel %vm94_vm13, 1.0, %v502_v12  ;;  %vm157_vm14 = vcmp.eq.s32.totalorder %v57_v9, %v547_v5  ;;  %vm158_vm15 = vcmp.eq.s32.totalorder %v58_v10, %v547_v5  ;;  %v75_v36 = vadd.s32 160, %v543_v1 }
  0x33   :  { %v392_v37 = vpack.c.bf16 %v238_v33, %v237_v32  ;;  %v189_v38 = vsel %vm157_vm14, 1.0, %v502_v12  ;;  %v190_v39 = vsel %vm158_vm15, 1.0, %v502_v12  ;;  %v76_v40 = vadd.s32 168, %v543_v1 }
  0x34   :  { %v221_v41 = vsub.f32 %v125_v34, %v189_v38  ;;  %v222_v42 = vsub.f32 %v126_v35, %v190_v39  ;;  %vm111_vm0 = vcmp.eq.s32.totalorder %v75_v36, %v555_v11  ;;  %vm175_vm1 = vcmp.eq.s32.totalorder %v75_v36, %v547_v5 }
  0x35   :  { %393 = vmatprep.subr.bf16.mxu0 %v392_v37  ;;  %vm112_vm2 = vcmp.eq.s32.totalorder %v76_v40, %v555_v11  ;;  %v143_v43 = vsel %vm111_vm0, 1.0, %v502_v12  ;;  %vm176_vm3 = vcmp.eq.s32.totalorder %v76_v40, %v547_v5  ;;  %v207_v44 = vsel %vm175_vm1, 1.0, %v502_v12 }
  0x36   :  { %v394_v45 = vpack.c.bf16 %v222_v42, %v221_v41  ;;  %v144_v46 = vsel %vm112_vm2, 1.0, %v502_v12  ;;  %v208_v47 = vsel %vm176_vm3, 1.0, %v502_v12  ;;  %v239_v48 = vsub.f32 %v143_v43, %v207_v44 }
  0x37   :  { %v240_v49 = vsub.f32 %v144_v46, %v208_v47  ;;  %v59_v50 = vadd.s32 32, %v543_v1  ;;  %v60_v51 = vadd.s32 40, %v543_v1  ;;  %v77_v52 = vadd.s32 176, %v543_v1 }
  0x38   :  { %395 = vmatpush3.bf16.msra.mxu0 %v394_v45  ;;  %v78_v53 = vadd.s32 184, %v543_v1  ;;  %v61_v54 = vadd.s32 48, %v543_v1  ;;  %v62_v55 = vadd.s32 56, %v543_v1  ;;  %v79_v56 = vadd.s32 192, %v543_v1 }
  0x39   :  { %v396_v57 = vpack.c.bf16 %v240_v49, %v239_v48  ;;  %vm95_vm4 = vcmp.eq.s32.totalorder %v59_v50, %v555_v11  ;;  %vm96_vm5 = vcmp.eq.s32.totalorder %v60_v51, %v555_v11  ;;  %vm159_vm6 = vcmp.eq.s32.totalorder %v59_v50, %v547_v5 }
  0x3a   :  { %v127_v58 = vsel %vm95_vm4, 1.0, %v502_v12  ;;  %v128_v59 = vsel %vm96_vm5, 1.0, %v502_v12  ;;  %vm160_vm7 = vcmp.eq.s32.totalorder %v60_v51, %v547_v5  ;;  %v191_v60 = vsel %vm159_vm6, 1.0, %v502_v12 }
  0x3b   :  { %397 = vmatprep.subr.bf16.mxu0 %v396_v57  ;;  %v192_v61 = vsel %vm160_vm7, 1.0, %v502_v12  ;;  %v223_v62 = vsub.f32 %v127_v58, %v191_v60  ;;  %vm113_vm8 = vcmp.eq.s32.totalorder %v77_v52, %v555_v11  ;;  %vm114_vm9 = vcmp.eq.s32.totalorder %v78_v53, %v555_v11 }
  0x3c   :  { %v224_v63 = vsub.f32 %v128_v59, %v192_v61  ;;  %v145_v0 = vsel %vm113_vm8, 1.0, %v502_v12  ;;  %v146_v2 = vsel %vm114_vm9, 1.0, %v502_v12  ;;  %vm177_vm10 = vcmp.eq.s32.totalorder %v77_v52, %v547_v5 }
  0x3d   :  { %vm178_vm11 = vcmp.eq.s32.totalorder %v78_v53, %v547_v5  ;;  %v209_v3 = vsel %vm177_vm10, 1.0, %v502_v12  ;;  %vm97_vm12 = vcmp.eq.s32.totalorder %v61_v54, %v555_v11  ;;  %vm98_vm13 = vcmp.eq.s32.totalorder %v62_v55, %v555_v11 }
  0x3e   :  { %v398_v4 = vpack.c.bf16 %v224_v63, %v223_v62  ;;  %v210_v6 = vsel %vm178_vm11, 1.0, %v502_v12  ;;  %v241_v7 = vsub.f32 %v145_v0, %v209_v3  ;;  %v129_v8 = vsel %vm97_vm12, 1.0, %v502_v12 }
  0x3f   :  { %v242_v9 = vsub.f32 %v146_v2, %v210_v6  ;;  %v130_v10 = vsel %vm98_vm13, 1.0, %v502_v12  ;;  %vm161_vm14 = vcmp.eq.s32.totalorder %v61_v54, %v547_v5  ;;  %vm162_vm15 = vcmp.eq.s32.totalorder %v62_v55, %v547_v5 }
  0x40   :  { %399 = vmatpush3.bf16.msra.mxu0 %v398_v4  ;;  %v193_v13 = vsel %vm161_vm14, 1.0, %v502_v12  ;;  %v194_v14 = vsel %vm162_vm15, 1.0, %v502_v12  ;;  %v80_v15 = vadd.s32 200, %v543_v1  ;;  %vm115_vm0 = vcmp.eq.s32.totalorder %v79_v56, %v555_v11 }
  0x41   :  { %v400_v16 = vpack.c.bf16 %v242_v9, %v241_v7  ;;  %v225_v17 = vsub.f32 %v129_v8, %v193_v13  ;;  %v226_v18 = vsub.f32 %v130_v10, %v194_v14  ;;  %v147_v19 = vsel %vm115_vm0, 1.0, %v502_v12 }
  0x42   :  { %vm116_vm1 = vcmp.eq.s32.totalorder %v80_v15, %v555_v11  ;;  %vm179_vm2 = vcmp.eq.s32.totalorder %v79_v56, %v547_v5  ;;  %vm180_vm3 = vcmp.eq.s32.totalorder %v80_v15, %v547_v5  ;;  %v63_v20 = vadd.s32 64, %v543_v1 }
  0x43   :  { %401 = vmatprep.subr.bf16.mxu0 %v400_v16  ;;  %v402_v21 = vpack.c.bf16 %v226_v18, %v225_v17  ;;  %v148_v22 = vsel %vm116_vm1, 1.0, %v502_v12  ;;  %v211_v23 = vsel %vm179_vm2, 1.0, %v502_v12  ;;  %v212_v24 = vsel %vm180_vm3, 1.0, %v502_v12 }
  0x44   :  { %v243_v25 = vsub.f32 %v147_v19, %v211_v23  ;;  %v244_v26 = vsub.f32 %v148_v22, %v212_v24  ;;  %v64_v27 = vadd.s32 72, %v543_v1  ;;  %vm99_vm4 = vcmp.eq.s32.totalorder %v63_v20, %v555_v11 }
  0x45   :  { %403 = vmatpush3.bf16.msra.mxu0 %v402_v21  ;;  %v131_v28 = vsel %vm99_vm4, 1.0, %v502_v12  ;;  %vm163_vm5 = vcmp.eq.s32.totalorder %v63_v20, %v547_v5  ;;  %v81_v29 = vadd.s32 208, %v543_v1  ;;  %v82_v30 = vadd.s32 216, %v543_v1 }
  0x46   :  { %v404_v31 = vpack.c.bf16 %v244_v26, %v243_v25  ;;  %vm100_vm6 = vcmp.eq.s32.totalorder %v64_v27, %v555_v11  ;;  %vm164_vm7 = vcmp.eq.s32.totalorder %v64_v27, %v547_v5  ;;  %v195_v32 = vsel %vm163_vm5, 1.0, %v502_v12 }
  0x47   :  { %v132_v33 = vsel %vm100_vm6, 1.0, %v502_v12  ;;  %v196_v34 = vsel %vm164_vm7, 1.0, %v502_v12  ;;  %v227_v35 = vsub.f32 %v131_v28, %v195_v32  ;;  %vm117_vm8 = vcmp.eq.s32.totalorder %v81_v29, %v555_v11 }
  0x48   :  { %405 = vmatprep.subr.bf16.mxu0 %v404_v31  ;;  %v228_v36 = vsub.f32 %v132_v33, %v196_v34  ;;  %vm118_vm9 = vcmp.eq.s32.totalorder %v82_v30, %v555_v11  ;;  %v149_v37 = vsel %vm117_vm8, 1.0, %v502_v12  ;;  %vm181_vm10 = vcmp.eq.s32.totalorder %v81_v29, %v547_v5  ;;  %v50_v29 = vld [vmem:[#allocation2] sm:$0xff] }
  0x49   :  { %v150_v38 = vsel %vm118_vm9, 1.0, %v502_v12  ;;  %vm182_vm11 = vcmp.eq.s32.totalorder %v82_v30, %v547_v5  ;;  %v213_v39 = vsel %vm181_vm10, 1.0, %v502_v12  ;;  %v65_v40 = vadd.s32 80, %v543_v1  ;;  %v52_v30 = vld [vmem:[#allocation5] sm:$0xff] }
  0x4a   :  { %v406_v41 = vpack.c.bf16 %v228_v36, %v227_v35  ;;  %v214_v42 = vsel %vm182_vm11, 1.0, %v502_v12  ;;  %v245_v43 = vsub.f32 %v149_v37, %v213_v39  ;;  %v66_v44 = vadd.s32 88, %v543_v1 }
  0x4b   :  { %v246_v45 = vsub.f32 %v150_v38, %v214_v42  ;;  %vm101_vm12 = vcmp.eq.s32.totalorder %v65_v40, %v555_v11  ;;  %vm165_vm13 = vcmp.eq.s32.totalorder %v65_v40, %v547_v5  ;;  %v83_v46 = vadd.s32 224, %v543_v1 }
  0x4c   :  { %407 = vmatpush3.bf16.msra.mxu0 %v406_v41  ;;  %vm102_vm14 = vcmp.eq.s32.totalorder %v66_v44, %v555_v11  ;;  %v133_v47 = vsel %vm101_vm12, 1.0, %v502_v12  ;;  %vm166_vm15 = vcmp.eq.s32.totalorder %v66_v44, %v547_v5  ;;  %v197_v48 = vsel %vm165_vm13, 1.0, %v502_v12 }
  0x4d   :  { %v408_v49 = vpack.c.bf16 %v246_v45, %v245_v43  ;;  %v134_v50 = vsel %vm102_vm14, 1.0, %v502_v12  ;;  %v198_v51 = vsel %vm166_vm15, 1.0, %v502_v12  ;;  %v229_v52 = vsub.f32 %v133_v47, %v197_v48 }
  0x4e   :  { %v230_v53 = vsub.f32 %v134_v50, %v198_v51  ;;  %v84_v54 = vadd.s32 232, %v543_v1  ;;  %vm119_vm0 = vcmp.eq.s32.totalorder %v83_v46, %v555_v11  ;;  %vm183_vm1 = vcmp.eq.s32.totalorder %v83_v46, %v547_v5 }
  0x4f   :  { %409 = vmatprep.subr.bf16.mxu0 %v408_v49  ;;  %v151_v55 = vsel %vm119_vm0, 1.0, %v502_v12  ;;  %v215_v56 = vsel %vm183_vm1, 1.0, %v502_v12  ;;  %v67_v57 = vadd.s32 96, %v543_v1  ;;  %v68_v58 = vadd.s32 104, %v543_v1 }
  0x50   :  { %v410_v59 = vpack.c.bf16 %v230_v53, %v229_v52  ;;  %vm120_vm2 = vcmp.eq.s32.totalorder %v84_v54, %v555_v11  ;;  %vm184_vm3 = vcmp.eq.s32.totalorder %v84_v54, %v547_v5  ;;  %v247_v60 = vsub.f32 %v151_v55, %v215_v56 }
  0x51   :  { %v152_v61 = vsel %vm120_vm2, 1.0, %v502_v12  ;;  %v216_v62 = vsel %vm184_vm3, 1.0, %v502_v12  ;;  %vm103_vm4 = vcmp.eq.s32.totalorder %v67_v57, %v555_v11  ;;  %vm104_vm5 = vcmp.eq.s32.totalorder %v68_v58, %v555_v11 }
  0x52   :  { %411 = vmatpush3.bf16.msra.mxu0 %v410_v59  ;;  %v248_v63 = vsub.f32 %v152_v61, %v216_v62  ;;  %v135_v0 = vsel %vm103_vm4, 1.0, %v502_v12  ;;  %v136_v2 = vsel %vm104_vm5, 1.0, %v502_v12  ;;  %vm167_vm6 = vcmp.eq.s32.totalorder %v67_v57, %v547_v5 }
  0x53   :  { %vm168_vm7 = vcmp.eq.s32.totalorder %v68_v58, %v547_v5  ;;  %v199_v3 = vsel %vm167_vm6, 1.0, %v502_v12  ;;  %v85_v4 = vadd.s32 240, %v543_v1  ;;  %v86_v6 = vadd.s32 248, %v543_v1 }
  0x54   :  { %v412_v7 = vpack.c.bf16 %v248_v63, %v247_v60  ;;  %v200_v8 = vsel %vm168_vm7, 1.0, %v502_v12  ;;  %v231_v9 = vsub.f32 %v135_v0, %v199_v3  ;;  %v69_v10 = vadd.s32 112, %v543_v1 }
  0x55   :  { %v232_v13 = vsub.f32 %v136_v2, %v200_v8  ;;  %vm121_vm8 = vcmp.eq.s32.totalorder %v85_v4, %v555_v11  ;;  %vm122_vm9 = vcmp.eq.s32.totalorder %v86_v6, %v555_v11  ;;  %vm185_vm10 = vcmp.eq.s32.totalorder %v85_v4, %v547_v5 }
  0x56   :  { %413 = vmatprep.subr.bf16.mxu0 %v412_v7  ;;  %v153_v14 = vsel %vm121_vm8, 1.0, %v502_v12  ;;  %v154_v15 = vsel %vm122_vm9, 1.0, %v502_v12  ;;  %vm186_vm11 = vcmp.eq.s32.totalorder %v86_v6, %v547_v5  ;;  %v217_v16 = vsel %vm185_vm10, 1.0, %v502_v12 }
  0x57   :  { %v414_v17 = vpack.c.bf16 %v232_v13, %v231_v9  ;;  %v218_v18 = vsel %vm186_vm11, 1.0, %v502_v12  ;;  %v249_v19 = vsub.f32 %v153_v14, %v217_v16  ;;  %v70_v20 = vadd.s32 120, %v543_v1 }
  0x58   :  { %v250_v21 = vsub.f32 %v154_v15, %v218_v18  ;;  %vm105_vm12 = vcmp.eq.s32.totalorder %v69_v10, %v555_v11  ;;  %vm169_vm13 = vcmp.eq.s32.totalorder %v69_v10, %v547_v5 }
  0x59   :  { %415 = vmatpush3.bf16.msra.mxu0 %v414_v17  ;;  %vm106_vm14 = vcmp.eq.s32.totalorder %v70_v20, %v555_v11  ;;  %v137_v22 = vsel %vm105_vm12, 1.0, %v502_v12  ;;  %vm170_vm15 = vcmp.eq.s32.totalorder %v70_v20, %v547_v5  ;;  %v201_v23 = vsel %vm169_vm13, 1.0, %v502_v12 }
  0x5a   :  { %v416_v24 = vpack.c.bf16 %v250_v21, %v249_v19  ;;  %v138_v25 = vsel %vm106_vm14, 1.0, %v502_v12  ;;  %v202_v26 = vsel %vm170_vm15, 1.0, %v502_v12  ;;  %v233_v1 = vsub.f32 %v137_v22, %v201_v23 }
  0x5b   :  { %v234_v27 = vsub.f32 %v138_v25, %v202_v26  ;;  %v53_v11 = vcvt.s32.f32 %v52_v30 }
  0x5c   :  { %417 = vmatprep.subr.bf16.mxu0 %v416_v24 }
  0x5d   :  { %v418_v28 = vpack.c.bf16 %v234_v27, %v233_v1  ;;  %v321_v31 = vmul.f32 2.0, %v53_v11 }
  0x5f   :  { %419 = vmatpush3.bf16.msra.mxu0 %v418_v28  ;;  %v322_v33 = vsub.f32 1.0, %v321_v31 }
  0x62   :  { %316 = vmatmul.mubr.f32.vlgmr.msra.gmra.mrb[0].mxu0 %v50_v29 }
 0x135   :  { %v385_v32 = vpop.f32.mrb[0].mxu0 }
 0x136   :  { %v386_v5 = vpop.f32.mrb[1].mxu0 }
 0x137   :  { %v387_v34 = vadd.f32 %v386_v5, %v385_v32 }
 0x139   :  { %v323_v35 = vmul.f32 %v387_v34, %v322_v33 }
 0x13b   :  { %v325_v36 = vand.u32 2147483647, %v323_v35  ;;  %v324_v41 = vmax.f32 %v323_v35, 0.0 }
 0x13d   :  { %v326_v37 = vsub.f32 0.0, %v325_v36 }
 0x13f   :  { %v327_v38 = vmul.f32 1.442695, %v326_v37 }
 0x141   :  { %424 = vpow2.f32 %v327_v38 }
 0x14b   :  { %v425_v12 = vpop.eup %424 }
 0x14c   :  { %v329_v39 = vadd.f32 1.0, %v425_v12 }
 0x14e   :  { %426 = vlog2.f32 %v329_v39 }
 0x158   :  { %v427_v40 = vpop.eup %426 }
 0x159   :  { %v331_v42 = vmul.f32 0.6931472, %v427_v40 }
 0x15b   :  { %v332_v43 = vadd.f32 %v331_v42, %v324_v41 }
 0x15d   :  { %336 = vst [vmem:[#allocation7] sm:$0xff] %v332_v43 }
 0x15e   :  { %483 = shalt.err (!%p480_p6)
}
 0x15f   :  { %s484_s8 = scalar_lea.hbm %s725_s2, 128 }
 0x160   :  { %p485_p7 = scmp.ne.s32.totalorder %s725_s2, %s484_s8  ;;  %p488_p8 = scmp.lt.u32.totalorder %s484_s8, %s725_s2 }
 0x162   :  { %p490_p9 = pnand %p488_p8, %p485_p7 }
 0x164   :  { %493 = shalt.err (!%p490_p9)
}
 0x165   :  { %346 = dma.vmem_to_hbm [thread:$0]  %s344_s4, 128, %s725_s2, [#allocation4]  }
 0x166   :  { %498 = dma.done.wait [#allocation4], 128  }
 0x167   :  { %499 = vsyncadd [#allocation4], 4294967168 }
 0x168   :  { %350 = vsyncpa [#allocation3], 1 }
 0x169   :  { %351 = vsyncpa [#allocation6], 1 }
 0x16a   :  { %352 = vsyncpa [#allocation4], 1 }

</bundles_post_ra>
